<compile_context>
chip_gen: v6e
topology: v6e:2x2x1
jax: 0.10.0
libtpu: 0.0.40
codegen_flags: <defaults>
</compile_context>

<pallas_src>
import math

import jax
import jax.numpy as jnp
from jax.experimental import pallas as pl
from jax.experimental.pallas import tpu as pltpu

# Deterministic "transform list" parameters (module __init__ equivalents).
GAINS = (1.10, 0.95, 1.05, 0.90)
BIASES = (0.05, -0.02, 0.00, 0.03)
P_SKIP = 0.5          # RandomApply p: passthrough (skip) with probability p

_LANES = 128
_MAX_ROW_TILE = 1024  # 1024*128*4B = 512 KiB per f32 buffer; 8 operands * 2 bufs = 8 MiB


def _round_up(x, m):
    return ((x + m - 1) // m) * m


def _sublane_multiple(dtype):
    itemsize = jnp.dtype(dtype).itemsize
    return max(8, 32 // max(1, itemsize))  # 8 for f32, 16 for bf16, 32 for int8


def _transform_kernel(x1_ref, x2_ref, x3_ref, x4_ref,
                      o1_ref, o2_ref, o3_ref, o4_ref):
    # Each ref is one lane-dense (row_tile, 128) tile of one image.
    # Python-scalar constants are weakly typed, so the computation stays in the
    # native dtype (bf16 on v6e/v7x, f32 otherwise). Pure VPU elementwise.
    ins = (x1_ref, x2_ref, x3_ref, x4_ref)
    outs = (o1_ref, o2_ref, o3_ref, o4_ref)
    for x_ref, o_ref, g, b in zip(ins, outs, GAINS, BIASES):
        y = x_ref[...] * g + b                       # affine
        o_ref[...] = jnp.clip(y, 0.0, 1.0).astype(o_ref.dtype)  # clamp


def _apply_transforms(im1, im2, im3, im4):
    """Apply-branch: view each image as a lane-dense (rows, 128) slab, run one
    Pallas call over all four operands, and view back."""
    images = (im1, im2, im3, im4)
    shape = im1.shape
    dtype = im1.dtype
    itemsize = jnp.dtype(dtype).itemsize
    elems = math.prod(shape)

    sub = _sublane_multiple(dtype)
    rows = pl.cdiv(elems, _LANES)
    rows_p = _round_up(rows, sub)
    needs_pad = (rows_p * _LANES) != elems   # free reshape when already aligned

    def to_rows(im):
        flat = im.reshape(-1)
        if needs_pad:
            flat = jnp.pad(flat, (0, rows_p * _LANES - elems))
        return flat.reshape(rows_p, _LANES)

    packed = [to_rows(im) for im in images]

    # Row tiling: biggest tile up to _MAX_ROW_TILE, but keep >=2 grid blocks
    # where possible so the "parallel" grid axis can use both v7x TensorCores.
    row_tile = min(_MAX_ROW_TILE, rows_p)
    if rows_p >= 2 * sub:
        half = _round_up(-(-rows_p // 2), sub)
        row_tile = min(row_tile, half)
    grid = (pl.cdiv(rows_p, row_tile),)

    spec = pl.BlockSpec((row_tile, _LANES), lambda i: (i, 0))
    cost = pl.CostEstimate(
        flops=4 * 4 * elems,                        # mul+add+2 cmp/sel per elem/image
        transcendentals=0,
        bytes_accessed=2 * 4 * elems * itemsize)    # read + write, 4 images

    outs = pl.pallas_call(
        _transform_kernel,
        out_shape=tuple(jax.ShapeDtypeStruct((rows_p, _LANES), dtype)
                        for _ in range(4)),
        grid=grid,
        in_specs=[spec] * 4,
        out_specs=tuple([spec] * 4),
        compiler_params=pltpu.CompilerParams(
            dimension_semantics=("parallel",)),
        cost_estimate=cost,
    )(*packed)

    def from_rows(y):
        if needs_pad:
            return y.reshape(-1)[:elems].reshape(shape)
        return y.reshape(shape)

    return tuple(from_rows(y) for y in outs)


@jax.jit
def random_apply(key, im1, im2, im3, im4):
    # Module: `if torch.rand(1) < self.p: return inputs unchanged`.
    u = jax.random.uniform(key, (), jnp.float32)
    skip = u < jnp.float32(P_SKIP)
    return jax.lax.cond(
        skip,
        lambda ims: ims,
        lambda ims: _apply_transforms(*ims),
        (im1, im2, im3, im4),
    )


if __name__ == "__main__":
    key = jax.random.PRNGKey(0)
    k1, k2, k3, k4, kdec = jax.random.split(key, 5)
    shape = (2, 4, 16, 16)  # N, C, H, W
    im1 = jax.random.uniform(k1, shape, jnp.float32)
    im2 = jax.random.uniform(k2, shape, jnp.float32)
    im3 = jax.random.uniform(k3, shape, jnp.float32)
    im4 = jax.random.uniform(k4, shape, jnp.float32)
    ins = (im1, im2, im3, im4)

    def chain(x, g, b):
        return jnp.clip(x * g + b, 0.0, 1.0)

    # 1) Exercise the Pallas kernel directly (apply branch) and check numerics.
    t_outs = jax.jit(_apply_transforms)(im1, im2, im3, im4)
    jax.block_until_ready(t_outs)
    for i, (o, x) in enumerate(zip(t_outs, ins)):
        assert bool(jnp.allclose(o, chain(x, GAINS[i], BIASES[i]), atol=1e-6))

    # 2) Full RandomApply forward (random decision in the wrapper).
    outs = random_apply(kdec, im1, im2, im3, im4)
    jax.block_until_ready(outs)

    passthrough = all(
        bool(jnp.allclose(o, x, atol=1e-6)) for o, x in zip(outs, ins))
    transformed = all(
        bool(jnp.allclose(o, chain(x, GAINS[i], BIASES[i]), atol=1e-6))
        for i, (o, x) in enumerate(zip(outs, ins)))
    assert passthrough or transformed

    print("KERNEL_OK")
</pallas_src>

<mosaic_0001>
module attributes {stable_mosaic.version = 11 : i64} {
  func.func @_transform_kernel(%arg0: i32, %arg1: memref<8x128xf32, #tpu.memory_space<vmem>>, %arg2: memref<8x128xf32, #tpu.memory_space<vmem>>, %arg3: memref<8x128xf32, #tpu.memory_space<vmem>>, %arg4: memref<8x128xf32, #tpu.memory_space<vmem>>, %arg5: memref<8x128xf32, #tpu.memory_space<vmem>>, %arg6: memref<8x128xf32, #tpu.memory_space<vmem>>, %arg7: memref<8x128xf32, #tpu.memory_space<vmem>>, %arg8: memref<8x128xf32, #tpu.memory_space<vmem>>) attributes {dimension_semantics = [#tpu.dimension_semantics<parallel>], iteration_bounds = array<i64: 2>, scalar_prefetch = 0 : i64, scratch_operands = 0 : i64, tpu.core_type = #tpu.core_type<tc>, window_params = [{transform_indices = @transform_0, window_bounds = array<i64: 8, 128>}, {transform_indices = @transform_1, window_bounds = array<i64: 8, 128>}, {transform_indices = @transform_2, window_bounds = array<i64: 8, 128>}, {transform_indices = @transform_3, window_bounds = array<i64: 8, 128>}, {transform_indices = @transform_4, window_bounds = array<i64: 8, 128>}, {transform_indices = @transform_5, window_bounds = array<i64: 8, 128>}, {transform_indices = @transform_6, window_bounds = array<i64: 8, 128>}, {transform_indices = @transform_7, window_bounds = array<i64: 8, 128>}]} {
    %c0 = arith.constant 0 : index
    %c0_0 = arith.constant 0 : index
    %0 = vector.load %arg1[%c0, %c0_0] : memref<8x128xf32, #tpu.memory_space<vmem>>, vector<8x128xf32>
    %cst = arith.constant 1.100000e+00 : f32
    %1 = vector.broadcast %cst : f32 to vector<8x128xf32>
    %2 = arith.mulf %0, %1 : vector<8x128xf32>
    %cst_1 = arith.constant 5.000000e-02 : f32
    %3 = vector.broadcast %cst_1 : f32 to vector<8x128xf32>
    %4 = arith.addf %2, %3 : vector<8x128xf32>
    %cst_2 = arith.constant 0.000000e+00 : f32
    %cst_3 = arith.constant 1.000000e+00 : f32
    %5 = vector.broadcast %cst_2 : f32 to vector<8x128xf32>
    %6 = arith.maximumf %5, %4 : vector<8x128xf32>
    %7 = vector.broadcast %cst_3 : f32 to vector<8x128xf32>
    %8 = arith.minimumf %7, %6 : vector<8x128xf32>
    %c0_4 = arith.constant 0 : index
    %c0_5 = arith.constant 0 : index
    %9 = vector.load %arg5[%c0_4, %c0_5] : memref<8x128xf32, #tpu.memory_space<vmem>>, vector<8x128xf32>
    tpu.vector_store %arg5[%c0_4, %c0_5], %8 {strides = array<i32>} : memref<8x128xf32, #tpu.memory_space<vmem>>, vector<8x128xf32>,
    %c0_6 = arith.constant 0 : index
    %c0_7 = arith.constant 0 : index
    %10 = vector.load %arg2[%c0_6, %c0_7] : memref<8x128xf32, #tpu.memory_space<vmem>>, vector<8x128xf32>
    %cst_8 = arith.constant 0.949999988 : f32
    %11 = vector.broadcast %cst_8 : f32 to vector<8x128xf32>
    %12 = arith.mulf %10, %11 : vector<8x128xf32>
    %cst_9 = arith.constant -2.000000e-02 : f32
    %13 = vector.broadcast %cst_9 : f32 to vector<8x128xf32>
    %14 = arith.addf %12, %13 : vector<8x128xf32>
    %cst_10 = arith.constant 0.000000e+00 : f32
    %cst_11 = arith.constant 1.000000e+00 : f32
    %15 = vector.broadcast %cst_10 : f32 to vector<8x128xf32>
    %16 = arith.maximumf %15, %14 : vector<8x128xf32>
    %17 = vector.broadcast %cst_11 : f32 to vector<8x128xf32>
    %18 = arith.minimumf %17, %16 : vector<8x128xf32>
    %c0_12 = arith.constant 0 : index
    %c0_13 = arith.constant 0 : index
    %19 = vector.load %arg6[%c0_12, %c0_13] : memref<8x128xf32, #tpu.memory_space<vmem>>, vector<8x128xf32>
    tpu.vector_store %arg6[%c0_12, %c0_13], %18 {strides = array<i32>} : memref<8x128xf32, #tpu.memory_space<vmem>>, vector<8x128xf32>,
    %c0_14 = arith.constant 0 : index
    %c0_15 = arith.constant 0 : index
    %20 = vector.load %arg3[%c0_14, %c0_15] : memref<8x128xf32, #tpu.memory_space<vmem>>, vector<8x128xf32>
    %cst_16 = arith.constant 1.050000e+00 : f32
    %21 = vector.broadcast %cst_16 : f32 to vector<8x128xf32>
    %22 = arith.mulf %20, %21 : vector<8x128xf32>
    %cst_17 = arith.constant 0.000000e+00 : f32
    %23 = vector.broadcast %cst_17 : f32 to vector<8x128xf32>
    %24 = arith.addf %22, %23 : vector<8x128xf32>
    %cst_18 = arith.constant 0.000000e+00 : f32
    %cst_19 = arith.constant 1.000000e+00 : f32
    %25 = vector.broadcast %cst_18 : f32 to vector<8x128xf32>
    %26 = arith.maximumf %25, %24 : vector<8x128xf32>
    %27 = vector.broadcast %cst_19 : f32 to vector<8x128xf32>
    %28 = arith.minimumf %27, %26 : vector<8x128xf32>
    %c0_20 = arith.constant 0 : index
    %c0_21 = arith.constant 0 : index
    %29 = vector.load %arg7[%c0_20, %c0_21] : memref<8x128xf32, #tpu.memory_space<vmem>>, vector<8x128xf32>
    tpu.vector_store %arg7[%c0_20, %c0_21], %28 {strides = array<i32>} : memref<8x128xf32, #tpu.memory_space<vmem>>, vector<8x128xf32>,
    %c0_22 = arith.constant 0 : index
    %c0_23 = arith.constant 0 : index
    %30 = vector.load %arg4[%c0_22, %c0_23] : memref<8x128xf32, #tpu.memory_space<vmem>>, vector<8x128xf32>
    %cst_24 = arith.constant 0.899999976 : f32
    %31 = vector.broadcast %cst_24 : f32 to vector<8x128xf32>
    %32 = arith.mulf %30, %31 : vector<8x128xf32>
    %cst_25 = arith.constant 3.000000e-02 : f32
    %33 = vector.broadcast %cst_25 : f32 to vector<8x128xf32>
    %34 = arith.addf %32, %33 : vector<8x128xf32>
    %cst_26 = arith.constant 0.000000e+00 : f32
    %cst_27 = arith.constant 1.000000e+00 : f32
    %35 = vector.broadcast %cst_26 : f32 to vector<8x128xf32>
    %36 = arith.maximumf %35, %34 : vector<8x128xf32>
    %37 = vector.broadcast %cst_27 : f32 to vector<8x128xf32>
    %38 = arith.minimumf %37, %36 : vector<8x128xf32>
    %c0_28 = arith.constant 0 : index
    %c0_29 = arith.constant 0 : index
    %39 = vector.load %arg8[%c0_28, %c0_29] : memref<8x128xf32, #tpu.memory_space<vmem>>, vector<8x128xf32>
    tpu.vector_store %arg8[%c0_28, %c0_29], %38 {strides = array<i32>} : memref<8x128xf32, #tpu.memory_space<vmem>>, vector<8x128xf32>,
    return
  }
  func.func @transform_0(%arg0: i32) -> (i32, i32) {
    %c0_i32 = arith.constant 0 : i32
    %c0_i32_0 = arith.constant 0 : i32
    return %arg0, %c0_i32 : i32, i32
  }
  func.func @transform_1(%arg0: i32) -> (i32, i32) {
    %c0_i32 = arith.constant 0 : i32
    %c0_i32_0 = arith.constant 0 : i32
    return %arg0, %c0_i32 : i32, i32
  }
  func.func @transform_2(%arg0: i32) -> (i32, i32) {
    %c0_i32 = arith.constant 0 : i32
    %c0_i32_0 = arith.constant 0 : i32
    return %arg0, %c0_i32 : i32, i32
  }
  func.func @transform_3(%arg0: i32) -> (i32, i32) {
    %c0_i32 = arith.constant 0 : i32
    %c0_i32_0 = arith.constant 0 : i32
    return %arg0, %c0_i32 : i32, i32
  }
  func.func @transform_4(%arg0: i32) -> (i32, i32) {
    %c0_i32 = arith.constant 0 : i32
    %c0_i32_0 = arith.constant 0 : i32
    return %arg0, %c0_i32 : i32, i32
  }
  func.func @transform_5(%arg0: i32) -> (i32, i32) {
    %c0_i32 = arith.constant 0 : i32
    %c0_i32_0 = arith.constant 0 : i32
    return %arg0, %c0_i32 : i32, i32
  }
  func.func @transform_6(%arg0: i32) -> (i32, i32) {
    %c0_i32 = arith.constant 0 : i32
    %c0_i32_0 = arith.constant 0 : i32
    return %arg0, %c0_i32 : i32, i32
  }
  func.func @transform_7(%arg0: i32) -> (i32, i32) {
    %c0_i32 = arith.constant 0 : i32
    %c0_i32_0 = arith.constant 0 : i32
    return %arg0, %c0_i32 : i32, i32
  }
}

</mosaic_0001>

<bundles_post_ra>
// kernel: _apply_transforms.1
= control target key start
LH: loop header
LB: loop body
LE: loop exit
PB: predicated region body
PF: predicated region fallthrough
CT: control target
= control target key end

     0   :  { %s633_s24 = smov 0   ;;  %s678_s0 = inlined_call_operand.vmem [shape: f32[16,128], index: 0, kind: input, shape index: {}]   ;;  %s679_s1 = inlined_call_operand.vmem [shape: f32[16,128], index: 1, kind: input, shape index: {}]   ;;  %s680_s2 = inlined_call_operand.vmem [shape: f32[16,128], index: 2, kind: input, shape index: {}]   ;;  %s681_s3 = inlined_call_operand.vmem [shape: f32[16,128], index: 3, kind: input, shape index: {}]   ;;  %s682_s4 = inlined_call_operand.vmem [shape: f32[16,128], index: 4, kind: output, shape index: {0}]   ;;  %s683_s5 = inlined_call_operand.vmem [shape: f32[16,128], index: 5, kind: output, shape index: {1}]   ;;  %s684_s6 = inlined_call_operand.vmem [shape: f32[16,128], index: 6, kind: output, shape index: {2}]   ;;  %s685_s7 = inlined_call_operand.vmem [shape: f32[16,128], index: 7, kind: output, shape index: {3}]  }
   0x1 LB: > { %s562_s25 = sadd.s32 4294967295, %s591_s24   ;;  %p566_p0 = scmp.ge.s32.totalorder %s591_s24, 1  ;;  %s591_s24 = sphi %s633_s24, %s18_s24  }
   0x2   : > { %p270_p1 = scmp.lt.s32.totalorder %s591_s24, 3 }
   0x4   : > { %p271_p2 = pnand %p566_p0, %p270_p1 }
   0x5   : > { %p324_p3 = scmp.lt.s32.totalorder (!%p271_p2), %s562_s25, 1 }
   0x6   : > { %274 = sbr.rel (%p271_p2) target bundleno = 27 (0x1b), region = 36 }
   0xb   : > { %s687_s25 = smov (!%p324_p3, %s562_s25), 1 }
   0xc   : > { %s641_s26 = sshll.u32 %s687_s25, 3 }
   0xd   : > { %s327_s29 = scalar_lea.vmem %s678_s0, %s641_s26  ;;  %s331_s9 = scalar_lea.vmem %s679_s1, %s641_s26 }
   0xe   : > { %v356_v0 = vld [vmem:[%s327_s29] sm:$0xff]  ;;  %s335_s12 = scalar_lea.vmem %s680_s2, %s641_s26  ;;  %s339_s15 = scalar_lea.vmem %s681_s3, %s641_s26 }
   0xf   : > { %v357_v1 = vmul.f32 1.1, %v356_v0  ;;  %v362_v2 = vld [vmem:[%s331_s9] sm:$0xff]  ;;  %s343_s18 = scalar_lea.vmem %s682_s4, %s641_s26  ;;  %s351_s21 = scalar_lea.vmem %s684_s6, %s641_s26 }
  0x10   : > { %v363_v3 = vmul.f32 0.95, %v362_v2  ;;  %v368_v4 = vld [vmem:[%s335_s12] sm:$0xff]  ;;  %s347_s25 = scalar_lea.vmem %s683_s5, %s641_s26  ;;  %s355_s29 = scalar_lea.vmem %s685_s7, %s641_s26 }
  0x11   : > { %v358_v5 = vadd.f32 0.05, %v357_v1  ;;  %v369_v6 = vmul.f32 1.05, %v368_v4  ;;  %v374_v7 = vld [vmem:[%s339_s15] sm:$0xff] }
  0x12   : > { %v364_v8 = vadd.f32 -0.02, %v363_v3  ;;  %v375_v9 = vmul.f32 0.9, %v374_v7 }
  0x13   : > { %v359_v10 = vmax.f32 %v358_v5, 0.0  ;;  %v371_v11 = vmax.f32 %v369_v6, 0.0 }
  0x14   : > { %v365_v12 = vmax.f32 %v364_v8, 0.0  ;;  %v376_v13 = vadd.f32 0.03, %v375_v9 }
  0x15   : > { %v360_v14 = vmin.f32 %v359_v10, 1.0  ;;  %v372_v15 = vmin.f32 %v371_v11, 1.0 }
  0x16   : > { %v366_v16 = vmin.f32 %v365_v12, 1.0  ;;  %v377_v17 = vmax.f32 %v376_v13, 0.0 }
  0x17   : > { %361 = vst [vmem:[%s343_s18] sm:$0xff] %v360_v14  ;;  %373 = vst [vmem:[%s351_s21] sm:$0xff] %v372_v15 }
  0x18   : > { %367 = vst [vmem:[%s347_s25] sm:$0xff] %v366_v16  ;;  %v378_v18 = vmin.f32 %v377_v17, 1.0 }
  0x1a   : > { %379 = vst [vmem:[%s355_s29] sm:$0xff] %v378_v18 }
  0x1b PF: > { %s18_s24 = sadd.s32 1, %s591_s24  }
  0x1c   : > { %p15_p4 = scmp.ge.s32.totalorder %s18_s24, 4  }
  0x1e   :  { %17 = sbr.rel (!%p15_p4) target bundleno = 1 (0x1), region = 111 }

</bundles_post_ra>
